<compile_context>
chip_gen: v7x
topology: tpu7x:2x2x1
jax: 0.10.0
libtpu: 0.0.40
codegen_flags: <defaults>
</compile_context>

<pallas_src>
import functools

import jax
import jax.numpy as jnp
import numpy as np
from jax.experimental import pallas as pl
from jax.experimental.pallas import tpu as pltpu

_LANES = 128


def _round_up(x: int, m: int) -> int:
    return (x + m - 1) // m * m


def _default_block_rows(ks: int) -> int:
    """Rows per tile so one (3, TR, ks) f32 buffer is ~6 MiB (lane-padded)."""
    lanes = _round_up(ks, _LANES)
    target_elems = 512 * 1024          # per-channel elements per tile
    return max(8, (target_elems // lanes) // 8 * 8)


def _tensorcores_per_device() -> int:
    """Best-effort count of TensorCores per JAX device (perf heuristic only)."""
    try:
        d = jax.devices()[0]
        if d.platform != "tpu":
            return 1
        n = getattr(d, "num_cores", None)
        if isinstance(n, int) and 1 <= n <= 8:
            return n
        kind = (getattr(d, "device_kind", "") or "").lower()
        if "v7" in kind:               # v7x: 2 TensorCores per chip
            return 2
    except Exception:
        pass
    return 1


def _psf_loss_kernel(psf_ref, partial_ref, *, ks: int, block_rows: int, n_seq: int):
    # psf_ref:     (3, block_rows, ks) VMEM tile of the PSF.
    # partial_ref: (1, 3, 1) resident output block -- per-parallel-slice,
    #              per-channel partial sums accumulated in f32 across the
    #              trailing "arbitrary" row-tile axis.
    p = pl.program_id(0)               # parallel slice (multi-TC axis)
    t = pl.program_id(1)               # row-tile within the slice (reduction)

    @pl.when(t == 0)
    def _init():
        partial_ref[...] = jnp.zeros_like(partial_ref)

    tile = p * n_seq + t               # n_par * n_seq == n_tiles (no clamp)
    row0 = tile * block_rows

    # torch.linspace(-1, 1, ks)[i] = -1 + 2*i/(ks-1); fold the trailing
    # 1/sqrt(2) of r into the coefficients.  Separable build: only the final
    # broadcast add + sqrt touch the full (block_rows, ks) shape.
    denom = max(ks - 1, 1)
    c1 = np.float32(2.0 / (denom * np.sqrt(2.0)))
    c0 = np.float32(-1.0 / np.sqrt(2.0))

    rows = row0 + jax.lax.broadcasted_iota(jnp.int32, (block_rows, 1), 0)
    cols = jax.lax.broadcasted_iota(jnp.int32, (1, ks), 1)
    y2 = (rows.astype(jnp.float32) * c1 + c0) ** 2        # (block_rows, 1)
    x2 = (cols.astype(jnp.float32) * c1 + c0) ** 2        # (1, ks)
    r = jnp.sqrt(y2 + x2)                                  # (block_rows, ks)

    prod = psf_ref[...].astype(jnp.float32) * r[None, :, :]   # (3, TR, ks)
    row_sums = jnp.sum(prod, axis=2)                           # (3, TR)

    # Mask rows past the end of the PSF (only the last, partial tile needs it;
    # trace-time check).  Masking after the lane reduction keeps it cheap and
    # NaN-safe: garbage rows collapse into row_sums and are zeroed here.
    if ks % block_rows != 0:
        valid = (row0 + jax.lax.broadcasted_iota(jnp.int32, (1, block_rows), 1)) < ks
        row_sums = jnp.where(valid, row_sums, 0.0)

    ch = jnp.sum(row_sums, axis=1, keepdims=True)              # (3, 1)
    partial_ref[...] += ch[None, :, :]


def psf_loss_ref(psf):
    """Pure-JAX reference matching the PyTorch forward."""
    ks = psf.shape[1]
    lin = jnp.linspace(-1.0, 1.0, ks, dtype=jnp.float32)
    x, y = jnp.meshgrid(lin, lin, indexing="xy")
    r = jnp.sqrt(x ** 2 + y ** 2) / np.sqrt(2.0)
    psf = psf.astype(jnp.float32)
    return (jnp.sum(psf[0] * r) ** 2
            + jnp.sum(psf[1] * r) ** 2
            + jnp.sum(psf[2] * r) ** 2)


@functools.partial(jax.jit, static_argnames=("block_rows", "force_pallas"))
def psf_loss(psf, *, block_rows=None, force_pallas=False):
    """PSFLoss forward.  psf: (3, ks, ks), any float dtype (f32 accumulate)."""
    assert psf.ndim == 3 and psf.shape[0] == 3 and psf.shape[1] == psf.shape[2]
    ks = psf.shape[1]

    # Fast path: for small PSFs the whole problem is a few KiB and the fixed
    # pallas_call launch overhead dominates; plain XLA is as fast or faster.
    if ks <= 128 and not force_pallas:
        return psf_loss_ref(psf)

    tr = block_rows if block_rows is not None else _default_block_rows(ks)
    tr = min(tr, ks)
    if tr < ks:
        tr = max(8, (tr // 8) * 8)     # (8, 128) rule on the 2nd-minor block dim
    n_tiles = pl.cdiv(ks, tr)

    # Multi-TensorCore split only when it is free: n_par must divide n_tiles
    # evenly (no duplicate clamped-tile DMA) and the chip must have >1 TC.
    n_par = min(_tensorcores_per_device(), 2)
    if n_par > 1 and (n_tiles < 2 or n_tiles % n_par != 0):
        n_par = 1
    n_seq = n_tiles // n_par

    partials = pl.pallas_call(
        functools.partial(_psf_loss_kernel, ks=ks, block_rows=tr, n_seq=n_seq),
        grid=(n_par, n_seq),
        in_specs=[pl.BlockSpec((3, tr, ks), lambda p, t: (0, p * n_seq + t, 0))],
        out_specs=pl.BlockSpec((1, 3, 1), lambda p, t: (p, 0, 0)),
        out_shape=jax.ShapeDtypeStruct((n_par, 3, 1), jnp.float32),
        compiler_params=pltpu.CompilerParams(
            dimension_semantics=("parallel", "arbitrary"),
            vmem_limit_bytes=48 * 1024 * 1024),
    )(psf)

    ch_sums = jnp.sum(partials[:, :, 0], axis=0)       # (3,)
    return jnp.sum(ch_sums * ch_sums)


if __name__ == "__main__":
    k1, k2 = jax.random.split(jax.random.PRNGKey(0))

    # Case 1: ks=16 (typical PSFLoss size) -- force the Pallas path so the
    # kernel itself is exercised at a small, single-block shape.
    ks = 16
    psf = jax.random.uniform(k1, (3, ks, ks), dtype=jnp.float32)
    psf = psf / jnp.sum(psf, axis=(1, 2), keepdims=True)   # PSF-like: sums to 1
    out = jax.block_until_ready(psf_loss(psf, force_pallas=True))
    ref = jax.block_until_ready(psf_loss_ref(psf))
    assert jnp.allclose(out, ref, rtol=1e-5, atol=1e-6), (out, ref)

    # Case 2: ks=160 with 64-row tiles -- exercises the pipelined multi-tile
    # grid, the resident accumulator and the partial-last-tile row masking.
    ks2 = 160
    psf2 = jax.random.uniform(k2, (3, ks2, ks2), dtype=jnp.float32)
    psf2 = psf2 / jnp.sum(psf2, axis=(1, 2), keepdims=True)
    out2 = jax.block_until_ready(psf_loss(psf2, block_rows=64))
    ref2 = jax.block_until_ready(psf_loss_ref(psf2))
    assert jnp.allclose(out2, ref2, rtol=1e-5, atol=1e-6), (out2, ref2)

    print("KERNEL_OK")
</pallas_src>

<mosaic_0001>
module attributes {stable_mosaic.version = 11 : i64} {
  func.func @_psf_loss_kernel(%arg0: i32, %arg1: i32, %arg2: memref<3x16x16xf32, #tpu.memory_space<vmem>>, %arg3: memref<1x3x1xf32, #tpu.memory_space<vmem>>) attributes {dimension_semantics = [#tpu.dimension_semantics<parallel>, #tpu.dimension_semantics<arbitrary>], iteration_bounds = array<i64: 1, 1>, scalar_prefetch = 0 : i64, scratch_operands = 0 : i64, tpu.core_type = #tpu.core_type<tc>, window_params = [{transform_indices = @transform_0, window_bounds = array<i64: 3, 16, 16>}, {transform_indices = @transform_1, window_bounds = array<i64: 1, 3, 1>}]} {
    %c0_i32 = arith.constant 0 : i32
    %0 = arith.cmpi eq, %arg1, %c0_i32 : i32
    %1 = arith.extui %0 : i1 to i32
    %c0_i32_0 = arith.constant 0 : i32
    %2 = arith.cmpi ne, %1, %c0_i32_0 : i32
    scf.if %2 {
      %cst_14 = arith.constant 0.000000e+00 : f32
      %37 = vector.broadcast %cst_14 : f32 to vector<1x3x1xf32>
      %c0_15 = arith.constant 0 : index
      %c0_16 = arith.constant 0 : index
      %c0_17 = arith.constant 0 : index
      %38 = vector.load %arg3[%c0_15, %c0_16, %c0_17] : memref<1x3x1xf32, #tpu.memory_space<vmem>>, vector<1x3x1xf32>
      tpu.vector_store %arg3[%c0_15, %c0_16, %c0_17], %37 {strides = array<i32>} : memref<1x3x1xf32, #tpu.memory_space<vmem>>, vector<1x3x1xf32>,
    } else {
    }
    %c1_i32 = arith.constant 1 : i32
    %3 = arith.muli %arg0, %c1_i32 : i32
    %4 = arith.addi %3, %arg1 : i32
    %c16_i32 = arith.constant 16 : i32
    %5 = arith.muli %4, %c16_i32 : i32
    %6 = tpu.iota {dimensions = array<i32: 0>} : vector<16x1xi32>
    %7 = vector.broadcast %5 : i32 to vector<16x1xi32>
    %8 = arith.addi %7, %6 : vector<16x1xi32>
    %9 = tpu.iota {dimensions = array<i32: 1>} : vector<1x16xi32>
    %10 = arith.sitofp %8 : vector<16x1xi32> to vector<16x1xf32>
    %cst = arith.constant 0.094280906 : f32
    %11 = vector.broadcast %cst : f32 to vector<16x1xf32>
    %12 = arith.mulf %10, %11 : vector<16x1xf32>
    %cst_1 = arith.constant -0.707106769 : f32
    %13 = vector.broadcast %cst_1 : f32 to vector<16x1xf32>
    %14 = arith.addf %12, %13 : vector<16x1xf32>
    %15 = arith.mulf %14, %14 : vector<16x1xf32>
    %16 = arith.sitofp %9 : vector<1x16xi32> to vector<1x16xf32>
    %cst_2 = arith.constant 0.094280906 : f32
    %17 = vector.broadcast %cst_2 : f32 to vector<1x16xf32>
    %18 = arith.mulf %16, %17 : vector<1x16xf32>
    %cst_3 = arith.constant -0.707106769 : f32
    %19 = vector.broadcast %cst_3 : f32 to vector<1x16xf32>
    %20 = arith.addf %18, %19 : vector<1x16xf32>
    %21 = arith.mulf %20, %20 : vector<1x16xf32>
    %22 = vector.broadcast %15 : vector<16x1xf32> to vector<16x16xf32>
    %23 = vector.broadcast %21 : vector<1x16xf32> to vector<16x16xf32>
    %24 = arith.addf %22, %23 : vector<16x16xf32>
    %25 = math.sqrt %24 : vector<16x16xf32>
    %c0 = arith.constant 0 : index
    %c0_4 = arith.constant 0 : index
    %c0_5 = arith.constant 0 : index
    %26 = vector.load %arg2[%c0, %c0_4, %c0_5] : memref<3x16x16xf32, #tpu.memory_space<vmem>>, vector<3x16x16xf32>
    %27 = vector.shape_cast %25 : vector<16x16xf32> to vector<1x16x16xf32>
    %28 = vector.broadcast %27 : vector<1x16x16xf32> to vector<3x16x16xf32>
    %29 = arith.mulf %26, %28 : vector<3x16x16xf32>
    %cst_6 = arith.constant dense<0.000000e+00> : vector<3x16xf32>
    %30 = vector.multi_reduction <add>, %29, %cst_6 [2] : vector<3x16x16xf32> to vector<3x16xf32>
    %cst_7 = arith.constant dense<0.000000e+00> : vector<3xf32>
    %31 = vector.multi_reduction <add>, %30, %cst_7 [1] : vector<3x16xf32> to vector<3xf32>
    %32 = vector.shape_cast %31 : vector<3xf32> to vector<3x1xf32>
    %c0_8 = arith.constant 0 : index
    %c0_9 = arith.constant 0 : index
    %c0_10 = arith.constant 0 : index
    %33 = vector.load %arg3[%c0_8, %c0_9, %c0_10] : memref<1x3x1xf32, #tpu.memory_space<vmem>>, vector<1x3x1xf32>
    %34 = vector.shape_cast %32 : vector<3x1xf32> to vector<1x3x1xf32>
    %35 = arith.addf %33, %34 : vector<1x3x1xf32>
    %c0_11 = arith.constant 0 : index
    %c0_12 = arith.constant 0 : index
    %c0_13 = arith.constant 0 : index
    %36 = vector.load %arg3[%c0_11, %c0_12, %c0_13] : memref<1x3x1xf32, #tpu.memory_space<vmem>>, vector<1x3x1xf32>
    tpu.vector_store %arg3[%c0_11, %c0_12, %c0_13], %35 {strides = array<i32>} : memref<1x3x1xf32, #tpu.memory_space<vmem>>, vector<1x3x1xf32>,
    return
  }
  func.func @transform_0(%arg0: i32, %arg1: i32) -> (i32, i32, i32) {
    %c1_i32 = arith.constant 1 : i32
    %0 = arith.muli %arg0, %c1_i32 : i32
    %1 = arith.addi %0, %arg1 : i32
    %c0_i32 = arith.constant 0 : i32
    %c0_i32_0 = arith.constant 0 : i32
    %c0_i32_1 = arith.constant 0 : i32
    return %c0_i32, %1, %c0_i32_0 : i32, i32, i32
  }
  func.func @transform_1(%arg0: i32, %arg1: i32) -> (i32, i32, i32) {
    %c0_i32 = arith.constant 0 : i32
    %c0_i32_0 = arith.constant 0 : i32
    %c0_i32_1 = arith.constant 0 : i32
    return %arg0, %c0_i32, %c0_i32_0 : i32, i32, i32
  }
}

</mosaic_0001>

<bundles_post_ra>
// kernel: psf_loss.1
= control target key start
LH: loop header
LB: loop body
LE: loop exit
PB: predicated region body
PF: predicated region fallthrough
CT: control target
= control target key end

     0   :  { %6 = vsyncpa [#allocation3], 0  ;;  %s188_s6 = smov [#allocation2]   ;;  %s239_s0 = inlined_call_operand.hbm [shape: f32[3,16,16], index: 0, kind: input, shape index: {}]   ;;  %s240_s1 = inlined_call_operand.vmem [shape: f32[1,3,1], index: 1, kind: output, shape index: {}]  }
   0x1   :  { %s16_s7 = sshll.u32 %s188_s6, 4  ;;  %s164_s10 = scalar_lea.hbm %s239_s0, 768  ;;  %s17_s7 = int_to_ptr.vmem [resolvable:$true] %s16_s7 }
   0x2   :  { %p165_p0 = scmp.ne.s32.totalorder %s239_s0, %s164_s10  ;;  %p168_p1 = scmp.lt.u32.totalorder %s164_s10, %s239_s0 }
   0x4   :  { %p170_p2 = pnand %p168_p1, %p165_p0 }
   0x6   :  { %173 = shalt.err (!%p170_p2)
}
   0x7   :  { %s174_s15 = scalar_lea.vmem %s17_s7, 768  ;;  %p179_p4 = scmp.lt.s32.totalorder %s17_s7, %s17_s7 }
   0x8   :  { %p175_p3 = scmp.ne.s32.totalorder %s17_s7, %s174_s15  ;;  %p180_p5 = scmp.lt.s32.totalorder %s174_s15, %s174_s15 }
   0xa   :  { %p181_p6 = por %p180_p5, %p179_p4 }
   0xc   :  { %p182_p7 = pnand %p181_p6, %p175_p3 }
   0xe   :  { %185 = shalt.err (!%p182_p7)
}
   0xf   :  { %s189_s16 = smov 128   ;;  %s190_s17 = smov 8  }
  0x10   :  { %22 = dma.hbm_to_vmem [thread:$0]  %s239_s0, 768, %s17_s7, [#allocation3], %s189_s16, %s189_s16, %s190_s17  }
  0x11   :  { %186 = dma.done.wait [#allocation3], 768  }
  0x12   :  { %187 = vsyncadd [#allocation3], 4294966528  ;;  %v36_v0 = vlaneseq  ;;  %v74_v22 = vld [vmem:[#allocation2 + $0x10] sm:$0xff]  ;;  %v72_v23 = vld [vmem:[#allocation2] sm:$0xff]  ;;  %vm84_vm3 = vcmask 130048   ;;  %vm32_vm5 = vcmask 2048  }
  0x13   :  { %v75_v31 = vld [vmem:[#allocation2 + $0x18] sm:$0xff]  ;;  %v73_v32 = vld [vmem:[#allocation2 + $0x8] sm:$0xff]  ;;  %v76_v35 = vld [vmem:[#allocation2 + $0x20] sm:$0xff]  ;;  %v191_v49 = vmov 0.0   ;;  %vm118_vm6 = vcmask 130112   ;;  %vm138_vm7 = vcmask 1041409  }
  0x14   :  { %v37_v1 = vshrl.u32 %v36_v0, 7  ;;  %v43_v2 = vand.u32 127, %v36_v0  ;;  %v77_v34 = vld [vmem:[#allocation2 + $0x28] sm:$0xff]  ;;  %33 = vst.msk [vmem:[%s240_s1] sm:$0x7] %vm32_vm5, %v191_v49  ;;  %vm140_vm8 = vcmask 1042434  }
  0x15   :  { %vm143_vm9 = vcmask 124928  }
  0x16   :  { %v44_v3 = vcvt.s32.f32 %v37_v1  ;;  %v52_v4 = vcvt.s32.f32 %v43_v2  ;;  %v38_v5 = vadd.s32 8, %v37_v1  ;;  %v214_v6 = vsub.s32 %v43_v2, %v37_v1 }
  0x17   :  { %v113_v47 = vadd.s32 4294967288, %v43_v2 }
  0x18   :  { %v46_v7 = vmul.f32 0.094280906, %v44_v3  ;;  %v53_v8 = vmul.f32 0.094280906, %v52_v4  ;;  %v45_v9 = vcvt.s32.f32 %v38_v5 }
  0x19   :  { %v116_v48 = vsub.s32 %v113_v47, %v37_v1 }
  0x1a   :  { %v48_v10 = vadd.f32 -0.70710677, %v46_v7  ;;  %v54_v11 = vadd.f32 -0.70710677, %v53_v8  ;;  %v47_v12 = vmul.f32 0.094280906, %v45_v9 }
  0x1b   :  { %v147_v4 = vld [vmem:[%s240_s1] sm:$0x7] }
  0x1c   :  { %v50_v13 = vmul.f32 %v48_v10, %v48_v10  ;;  %v55_v14 = vmul.f32 %v54_v11, %v54_v11  ;;  %v49_v15 = vadd.f32 -0.70710677, %v47_v12 }
  0x1e   :  { %v56_v16 = vadd.f32 %v55_v14, %v50_v13  ;;  %v51_v17 = vmul.f32 %v49_v15, %v49_v15 }
  0x20   :  { %160 = vrsqrt.f32 %v56_v16  ;;  %v57_v18 = vadd.f32 %v55_v14, %v51_v17  ;;  %vm60_vm0 = vcmp.eq.f32.partialorder %v56_v16, inf  ;;  %v63_v20 = vand.u32 2147483648, %v56_v16 }
  0x21   :  { %vm62_vm1 = vcmp.eq.f32.partialorder %v56_v16, 0.0 }
  0x22   :  { %162 = vrsqrt.f32 %v57_v18  ;;  %vm67_vm2 = vcmp.eq.f32.partialorder %v57_v18, inf  ;;  %v70_v26 = vand.u32 2147483648, %v57_v18  ;;  %vm69_vm4 = vcmp.eq.f32.partialorder %v57_v18, 0.0 }
  0x2a   :  { %v161_v19 = vpop.eup %160 }
  0x2b   :  { %v59_v21 = vmul.f32 %v161_v19, %v56_v16 }
  0x2c   :  { %v163_v24 = vpop.eup %162 }
  0x2d   :  { %v61_v25 = vsel %vm60_vm0, %v56_v16, %v59_v21  ;;  %v66_v28 = vmul.f32 %v163_v24, %v57_v18 }
  0x2e   :  { %v64_v27 = vsel %vm62_vm1, %v63_v20, %v61_v25 }
  0x2f   :  { %v80_v29 = vmul.f32 %v74_v22, %v64_v27  ;;  %v78_v30 = vmul.f32 %v72_v23, %v64_v27  ;;  %v68_v33 = vsel %vm67_vm2, %v57_v18, %v66_v28  ;;  %v82_v42 = vmul.f32 %v76_v35, %v64_v27 }
  0x30   :  { %v71_v38 = vsel %vm69_vm4, %v70_v26, %v68_v33 }
  0x31   :  { %v91_v36 = vsel %vm84_vm3, %v80_v29, 0.0  ;;  %v85_v37 = vsel %vm84_vm3, %v78_v30, 0.0  ;;  %v81_v39 = vmul.f32 %v75_v31, %v71_v38  ;;  %v79_v40 = vmul.f32 %v73_v32, %v71_v38 }
  0x32   :  { %92 = vadd.xlane.f32.xlu1 %v91_v36  ;;  %86 = vadd.xlane.f32.xlu0 %v85_v37  ;;  %v83_v41 = vmul.f32 %v77_v34, %v71_v38  ;;  %v97_v46 = vsel %vm84_vm3, %v82_v42, 0.0 }
  0x33   :  { %v94_v43 = vsel %vm84_vm3, %v81_v39, 0.0  ;;  %v88_v44 = vsel %vm84_vm3, %v79_v40, 0.0 }
  0x34   :  { %v100_v45 = vsel %vm84_vm3, %v83_v41, 0.0 }
  0x36   :  { %95 = vadd.xlane.f32.xlu1 %v94_v43  ;;  %89 = vadd.xlane.f32.xlu0 %v88_v44 }
  0x3a   :  { %101 = vadd.xlane.f32.xlu1 %v100_v45  ;;  %98 = vadd.xlane.f32.xlu0 %v97_v46 }
  0xbf   :  { %v93_v50 = vpop.xlane.xlu1 %92  ;;  %v87_v51 = vpop.xlane.xlu0 %86 }
  0xc0   :  { %v123_v54 = vrot.slane %v93_v50, %v214_v6  ;;  %v112_v55 = vrot.slane %v87_v51, %v214_v6 }
  0xc3   :  { %v96_v52 = vpop.xlane.xlu1 %95  ;;  %v90_v53 = vpop.xlane.xlu0 %89 }
  0xc4   :  { %v127_v56 = vrot.slane %v96_v52, %v116_v48  ;;  %v117_v57 = vrot.slane %v90_v53, %v116_v48 }
  0xc6   :  { %v128_v58 = vsel %vm118_vm6, %v127_v56, %v123_v54  ;;  %v119_v59 = vsel %vm118_vm6, %v117_v57, %v112_v55 }
  0xc7   :  { %v102_v60 = vpop.xlane.xlu1 %101  ;;  %v99_v61 = vpop.xlane.xlu0 %98  ;;  %v139_v62 = vsel %vm138_vm7, %v128_v58, %v119_v59 }
  0xc8   :  { %v136_v63 = vrot.slane %v102_v60, %v116_v48  ;;  %v132_v0 = vrot.slane %v99_v61, %v214_v6 }
  0xca   :  { %v137_v1 = vsel %vm118_vm6, %v136_v63, %v132_v0 }
  0xcb   :  { %v141_v2 = vsel %vm140_vm8, %v137_v1, %v139_v62 }
  0xcc   :  { %v144_v3 = vsel %vm143_vm9, %v141_v2, 0.0 }
  0xcd   :  { %145 = vadd.xlane.f32.xlu0 %v144_v3 }
 0x15a   :  { %v146_v5 = vpop.xlane.xlu0 %145 }
 0x15b   :  { %v148_v7 = vadd.f32 %v147_v4, %v146_v5 }
 0x15d   :  { %150 = vst.msk [vmem:[%s240_s1] sm:$0x7] %vm32_vm5, %v148_v7 }
 0x15e   :  { %155 = vsyncpa [#allocation3], 1 }

</bundles_post_ra>
